<compile_context>
chip_gen: v5e
topology: v5e:2x2
jax: 0.10.0
libtpu: 0.0.40
codegen_flags: <defaults>
</compile_context>

<pallas_src>
import functools

import jax
import jax.numpy as jnp
from jax.experimental import pallas as pl
from jax.experimental.pallas import tpu as pltpu


def _round_up(x, m):
    return (x + m - 1) // m * m


def _apply_act(y, kind):
    if kind == "sigmoid":
        return jax.nn.sigmoid(y)
    return jnp.maximum(y, 0.0)  # "relu"


# -----------------------------------------------------------------------------
# Fused kernel: bottom MLP + multi-table EmbeddingBag(sum) + dot interaction
#               + top MLP, one batch tile per grid step.
# -----------------------------------------------------------------------------
def _dlrm_fused_kernel(*refs, ntables, bag, table_rows, n_bot, n_top,
                       acts_bot, acts_top, num_int):
    # refs = idx, dense_x, tables..., (w,b) x n_bot, w0x, w0z, b0,
    #        (w,b) x (n_top-1), out
    idx_ref, x_ref = refs[0], refs[1]
    tbl_refs = refs[2:2 + ntables]
    p = 2 + ntables
    bot = [(refs[p + 2 * k], refs[p + 2 * k + 1]) for k in range(n_bot)]
    p += 2 * n_bot
    w0x_ref, w0z_ref, b0_ref = refs[p], refs[p + 1], refs[p + 2]
    p += 3
    top_rest = [(refs[p + 2 * k], refs[p + 2 * k + 1]) for k in range(n_top - 1)]
    o_ref = refs[-1]

    tb = idx_ref.shape[0]

    # ---- bottom MLP (activations never leave VMEM/vregs) ----
    h = x_ref[...]
    for (w_ref, b_ref), act in zip(bot, acts_bot):
        w = w_ref[...]
        y = jnp.dot(h.astype(w.dtype), w, preferred_element_type=jnp.float32)
        h = _apply_act(y + b_ref[...], act)
    x = h                                              # (tb, d) f32

    # ---- EmbeddingBag(mode='sum') per table: one-hot counts @ table (MXU) ----
    idx = idx_ref[...]                                 # (tb, ntables*bag) int32
    feats = [x]
    for t in range(ntables):
        rows = table_rows[t]
        iota = jax.lax.broadcasted_iota(jnp.int32, (tb, rows), 1)
        counts = jnp.zeros((tb, rows), jnp.float32)
        for l in range(bag):                           # bag is small & static
            c = t * bag + l
            counts = counts + (idx[:, c:c + 1] == iota).astype(jnp.float32)
        feats.append(jnp.dot(counts, tbl_refs[t][...],
                             preferred_element_type=jnp.float32))   # (tb, d)

    # ---- dot interaction: only lower-triangular pairs, no transpose/concat ----
    zcols = []
    for i in range(1, ntables + 1):                    # order matches torch li/lj
        for j in range(i):
            zcols.append(jnp.sum(feats[i] * feats[j], axis=1, keepdims=True))

    # ---- top MLP, layer 0 with split weight (no narrow-lane concat) ----
    w0x = w0x_ref[...]
    w0z = w0z_ref[...]                                 # f32, (num_int, m1)
    y = jnp.dot(x.astype(w0x.dtype), w0x, preferred_element_type=jnp.float32)
    for q in range(num_int):
        y = y + zcols[q] * w0z[q:q + 1, :]             # broadcast FMA (VALU)
    h = _apply_act(y + b0_ref[...], acts_top[0])

    for (w_ref, b_ref), act in zip(top_rest, acts_top[1:]):
        w = w_ref[...]
        y = jnp.dot(h.astype(w.dtype), w, preferred_element_type=jnp.float32)
        h = _apply_act(y + b_ref[...], act)

    o_ref[...] = h.astype(o_ref.dtype)                 # lane-dense unmasked store


# -----------------------------------------------------------------------------
# DLRM forward (sequential_forward semantics) -> one pallas_call
# -----------------------------------------------------------------------------
def dlrm_forward(dense_x, lS_i, params, bag, use_bf16=False, tile_batch=None):
    B, n0 = dense_x.shape
    tables = params["emb"]
    bot_params = params["bot"]
    top_params = params["top"]
    d = tables[0].shape[1]
    ntables = len(tables)
    n_bot, n_top = len(bot_params), len(top_params)
    num_int = (ntables + 1) * ntables // 2             # itself=False, 'dot'

    if tile_batch is None:
        tb = 256 if B >= 256 else (128 if B >= 128 else _round_up(B, 8))
    else:
        tb = tile_batch
    b_pad = _round_up(B, tb)

    cast = (lambda a: a.astype(jnp.bfloat16)) if use_bf16 else (lambda a: a)

    # dense input: pad batch to b_pad and feature dim to 128 lanes
    n0_pad = _round_up(n0, 128)
    dense_x_p = jnp.pad(dense_x, ((0, b_pad - B), (0, n0_pad - n0)))

    # indices: (B, ntables, bag) -> (b_pad, ntables*bag); padded rows use -1 so
    # the one-hot never matches and padded embedding sums are exactly zero.
    idx = jnp.stack([ix.reshape(B, bag).astype(jnp.int32) for ix in lS_i],
                    axis=1).reshape(B, ntables * bag)
    if b_pad > B:
        idx = jnp.pad(idx, ((0, b_pad - B), (0, 0)), constant_values=-1)

    n_out_last = top_params[-1][0].shape[1]
    out_w = _round_up(n_out_last, 128)                 # lane-dense output slab

    inputs = [idx, cast(dense_x_p)]
    in_specs = [pl.BlockSpec((tb, ntables * bag), lambda i: (i, 0)),
                pl.BlockSpec((tb, n0_pad), lambda i: (i, 0))]

    def add_resident(arr):                             # constant index_map -> VMEM-resident
        inputs.append(arr)
        in_specs.append(pl.BlockSpec(arr.shape, lambda i: (0, 0)))

    for t in tables:
        add_resident(t.astype(jnp.float32))

    acts_bot = tuple(a for (_, _, a) in bot_params)
    acts_top = tuple(a for (_, _, a) in top_params)

    for li, (w, b, _) in enumerate(bot_params):
        if li == 0 and n0_pad > n0:
            w = jnp.pad(w, ((0, n0_pad - n0), (0, 0)))  # zero-pad K: no-op math
        add_resident(cast(w))
        add_resident(b.astype(jnp.float32))

    # first top layer: split W0 into the dense part (rows 0:d) and the
    # interaction part (rows d:d+num_int) -> no in-kernel concat needed.
    w0, b0, _ = top_params[0]
    if n_top == 1 and out_w > n_out_last:
        w0 = jnp.pad(w0, ((0, 0), (0, out_w - n_out_last)))
        b0 = jnp.pad(b0, ((0, 0), (0, out_w - n_out_last)))
    assert w0.shape[0] == d + num_int
    add_resident(cast(w0[:d, :]))
    add_resident(w0[d:, :].astype(jnp.float32))        # W_z stays f32 (VALU path)
    add_resident(b0.astype(jnp.float32))

    for li, (w, b, _) in enumerate(top_params[1:]):
        if li == n_top - 2 and out_w > n_out_last:     # pad last layer to 128 lanes
            w = jnp.pad(w, ((0, 0), (0, out_w - n_out_last)))
            b = jnp.pad(b, ((0, 0), (0, out_w - n_out_last)))
        add_resident(cast(w))
        add_resident(b.astype(jnp.float32))

    kernel = functools.partial(
        _dlrm_fused_kernel, ntables=ntables, bag=bag,
        table_rows=tuple(int(t.shape[0]) for t in tables),
        n_bot=n_bot, n_top=n_top, acts_bot=acts_bot, acts_top=acts_top,
        num_int=num_int)

    out = pl.pallas_call(
        kernel,
        grid=(b_pad // tb,),
        in_specs=in_specs,
        out_specs=pl.BlockSpec((tb, out_w), lambda i: (i, 0)),
        out_shape=jax.ShapeDtypeStruct((b_pad, out_w), jnp.float32),
        compiler_params=pltpu.CompilerParams(
            dimension_semantics=("parallel",)),        # megacore/v7x: split batch
    )(*inputs)

    # loss_threshold == 0.0 -> no clamp applied (z = p)
    return out[:B, :n_out_last]


# -----------------------------------------------------------------------------
# pure-JAX reference for correctness check
# -----------------------------------------------------------------------------
def dlrm_forward_ref(dense_x, lS_i, params, bag):
    B = dense_x.shape[0]
    x = dense_x
    for (w_t, b, act) in params["bot"]:
        y = x @ w_t + b
        x = jnp.maximum(y, 0.0) if act == "relu" else jax.nn.sigmoid(y)
    ly = [tbl[idx].reshape(B, bag, -1).sum(axis=1)
          for tbl, idx in zip(params["emb"], lS_i)]
    d = x.shape[1]
    T = jnp.concatenate([x] + ly, axis=1).reshape(B, -1, d)
    Z = jnp.einsum("bid,bjd->bij", T, T)
    F = T.shape[1]
    li = jnp.array([i for i in range(F) for j in range(i)], dtype=jnp.int32)
    lj = jnp.array([j for i in range(F) for j in range(i)], dtype=jnp.int32)
    R = jnp.concatenate([x, Z[:, li, lj]], axis=1)
    p = R
    for (w_t, b, act) in params["top"]:
        y = p @ w_t + b
        p = jnp.maximum(y, 0.0) if act == "relu" else jax.nn.sigmoid(y)
    return p


# -----------------------------------------------------------------------------
# deterministic parameter construction (mirrors create_mlp / create_emb init)
# -----------------------------------------------------------------------------
def make_mlp_params(key, ln, sigmoid_layer):
    layers = []
    for i in range(len(ln) - 1):
        n, m = ln[i], ln[i + 1]
        key, kw, kb = jax.random.split(key, 3)
        W = jax.random.normal(kw, (m, n), jnp.float32) * jnp.sqrt(2.0 / (m + n))
        bt = jax.random.normal(kb, (m,), jnp.float32) * jnp.sqrt(1.0 / m)
        act = "sigmoid" if i == sigmoid_layer else "relu"
        layers.append((W.T, bt.reshape(1, m), act))    # store W transposed: (n, m)
    return key, layers


if __name__ == "__main__":
    key = jax.random.PRNGKey(0)

    # small DLRM config
    B = 2                 # batch
    L = 2                 # fixed bag size (indices per sample per table)
    m_spa = 16            # embedding dim
    ln_bot = [4, 32, m_spa]
    ln_emb = [10, 20, 30]                       # 3 embedding tables
    F = 1 + len(ln_emb)
    num_int = F * (F - 1) // 2
    ln_top = [m_spa + num_int, 32, 1]
    sigmoid_bot = -1
    sigmoid_top = len(ln_top) - 2

    key, bot = make_mlp_params(key, ln_bot, sigmoid_bot)
    key, top = make_mlp_params(key, ln_top, sigmoid_top)

    tables = []
    for n in ln_emb:
        key, kt = jax.random.split(key)
        bound = float(jnp.sqrt(1.0 / max(n, 5)))
        tables.append(jax.random.uniform(kt, (n, m_spa), jnp.float32, -bound, bound))

    params = {"bot": bot, "top": top, "emb": tables}

    lS_i = []
    for n in ln_emb:
        key, ki = jax.random.split(key)
        lS_i.append(jax.random.randint(ki, (B * L,), 0, n, dtype=jnp.int32))

    key, kx = jax.random.split(key)
    dense_x = jax.random.normal(kx, (B, ln_bot[0]), jnp.float32)

    ref = dlrm_forward_ref(dense_x, lS_i, params, L)

    # f32 path: same semantics as the PyTorch module
    out = jax.block_until_ready(dlrm_forward(dense_x, lS_i, params, L, use_bf16=False))
    assert out.shape == (B, 1)
    assert jnp.allclose(out, ref, atol=1e-4, rtol=1e-4), (out, ref)

    # bf16-MXU path (all generations): f32 accumulation, looser tolerance
    out_bf16 = jax.block_until_ready(dlrm_forward(dense_x, lS_i, params, L, use_bf16=True))
    assert out_bf16.shape == (B, 1)
    assert jnp.allclose(out_bf16, ref, atol=5e-2, rtol=5e-2), (out_bf16, ref)

    # larger batch exercising multi-tile grid + batch padding (tb=128, 2 tiles)
    B2 = 200
    key, kx2 = jax.random.split(key)
    dense_x2 = jax.random.normal(kx2, (B2, ln_bot[0]), jnp.float32)
    lS_i2 = []
    for n in ln_emb:
        key, ki2 = jax.random.split(key)
        lS_i2.append(jax.random.randint(ki2, (B2 * L,), 0, n, dtype=jnp.int32))
    ref2 = dlrm_forward_ref(dense_x2, lS_i2, params, L)
    out2 = jax.block_until_ready(dlrm_forward(dense_x2, lS_i2, params, L, use_bf16=False))
    assert out2.shape == (B2, 1)
    assert jnp.allclose(out2, ref2, atol=1e-4, rtol=1e-4)

    print("KERNEL_OK")
</pallas_src>

<mosaic_0001>
module attributes {stable_mosaic.version = 11 : i64} {
  func.func @_dlrm_fused_kernel(%arg0: i32, %arg1: memref<8x6xi32, #tpu.memory_space<vmem>>, %arg2: memref<8x128xf32, #tpu.memory_space<vmem>>, %arg3: memref<10x16xf32, #tpu.memory_space<vmem>>, %arg4: memref<20x16xf32, #tpu.memory_space<vmem>>, %arg5: memref<30x16xf32, #tpu.memory_space<vmem>>, %arg6: memref<128x32xf32, #tpu.memory_space<vmem>>, %arg7: memref<1x32xf32, #tpu.memory_space<vmem>>, %arg8: memref<32x16xf32, #tpu.memory_space<vmem>>, %arg9: memref<1x16xf32, #tpu.memory_space<vmem>>, %arg10: memref<16x32xf32, #tpu.memory_space<vmem>>, %arg11: memref<6x32xf32, #tpu.memory_space<vmem>>, %arg12: memref<1x32xf32, #tpu.memory_space<vmem>>, %arg13: memref<32x128xf32, #tpu.memory_space<vmem>>, %arg14: memref<1x128xf32, #tpu.memory_space<vmem>>, %arg15: memref<8x128xf32, #tpu.memory_space<vmem>>) attributes {dimension_semantics = [#tpu.dimension_semantics<parallel>], iteration_bounds = array<i64: 1>, scalar_prefetch = 0 : i64, scratch_operands = 0 : i64, tpu.core_type = #tpu.core_type<tc>, window_params = [{transform_indices = @transform_0, window_bounds = array<i64: 8, 6>}, {transform_indices = @transform_1, window_bounds = array<i64: 8, 128>}, {pipeline_mode = #tpu.pipeline_mode<synchronous>, transform_indices = @transform_2, window_bounds = array<i64: 10, 16>}, {pipeline_mode = #tpu.pipeline_mode<synchronous>, transform_indices = @transform_3, window_bounds = array<i64: 20, 16>}, {pipeline_mode = #tpu.pipeline_mode<synchronous>, transform_indices = @transform_4, window_bounds = array<i64: 30, 16>}, {pipeline_mode = #tpu.pipeline_mode<synchronous>, transform_indices = @transform_5, window_bounds = array<i64: 128, 32>}, {pipeline_mode = #tpu.pipeline_mode<synchronous>, transform_indices = @transform_6, window_bounds = array<i64: 1, 32>}, {pipeline_mode = #tpu.pipeline_mode<synchronous>, transform_indices = @transform_7, window_bounds = array<i64: 32, 16>}, {pipeline_mode = #tpu.pipeline_mode<synchronous>, transform_indices = @transform_8, window_bounds = array<i64: 1, 16>}, {pipeline_mode = #tpu.pipeline_mode<synchronous>, transform_indices = @transform_9, window_bounds = array<i64: 16, 32>}, {pipeline_mode = #tpu.pipeline_mode<synchronous>, transform_indices = @transform_10, window_bounds = array<i64: 6, 32>}, {pipeline_mode = #tpu.pipeline_mode<synchronous>, transform_indices = @transform_11, window_bounds = array<i64: 1, 32>}, {pipeline_mode = #tpu.pipeline_mode<synchronous>, transform_indices = @transform_12, window_bounds = array<i64: 32, 128>}, {pipeline_mode = #tpu.pipeline_mode<synchronous>, transform_indices = @transform_13, window_bounds = array<i64: 1, 128>}, {transform_indices = @transform_14, window_bounds = array<i64: 8, 128>}]} {
    %c0 = arith.constant 0 : index
    %c0_0 = arith.constant 0 : index
    %0 = vector.load %arg2[%c0, %c0_0] : memref<8x128xf32, #tpu.memory_space<vmem>>, vector<8x128xf32>
    %c0_1 = arith.constant 0 : index
    %c0_2 = arith.constant 0 : index
    %1 = vector.load %arg6[%c0_1, %c0_2] : memref<128x32xf32, #tpu.memory_space<vmem>>, vector<128x32xf32>
    %cst = arith.constant dense<0.000000e+00> : vector<8x32xf32>
    %2 = tpu.matmul %0, %1, %cst {dimension_numbers = #tpu.dot_dimension_numbers<[1], [0], [0], [1], [0, 0, 1, 1], [], []>} : vector<8x128xf32>, vector<128x32xf32>, vector<8x32xf32> -> vector<8x32xf32>
    %c0_3 = arith.constant 0 : index
    %c0_4 = arith.constant 0 : index
    %3 = vector.load %arg7[%c0_3, %c0_4] : memref<1x32xf32, #tpu.memory_space<vmem>>, vector<1x32xf32>
    %4 = vector.broadcast %3 : vector<1x32xf32> to vector<8x32xf32>
    %5 = arith.addf %2, %4 : vector<8x32xf32>
    %cst_5 = arith.constant 0.000000e+00 : f32
    %6 = vector.broadcast %cst_5 : f32 to vector<8x32xf32>
    %7 = arith.maximumf %5, %6 : vector<8x32xf32>
    %c0_6 = arith.constant 0 : index
    %c0_7 = arith.constant 0 : index
    %8 = vector.load %arg8[%c0_6, %c0_7] : memref<32x16xf32, #tpu.memory_space<vmem>>, vector<32x16xf32>
    %cst_8 = arith.constant dense<0.000000e+00> : vector<8x16xf32>
    %9 = tpu.matmul %7, %8, %cst_8 {dimension_numbers = #tpu.dot_dimension_numbers<[1], [0], [0], [1], [0, 0, 1, 1], [], []>} : vector<8x32xf32>, vector<32x16xf32>, vector<8x16xf32> -> vector<8x16xf32>
    %c0_9 = arith.constant 0 : index
    %c0_10 = arith.constant 0 : index
    %10 = vector.load %arg9[%c0_9, %c0_10] : memref<1x16xf32, #tpu.memory_space<vmem>>, vector<1x16xf32>
    %11 = vector.broadcast %10 : vector<1x16xf32> to vector<8x16xf32>
    %12 = arith.addf %9, %11 : vector<8x16xf32>
    %cst_11 = arith.constant 0.000000e+00 : f32
    %13 = vector.broadcast %cst_11 : f32 to vector<8x16xf32>
    %14 = arith.maximumf %12, %13 : vector<8x16xf32>
    %c0_12 = arith.constant 0 : index
    %c0_13 = arith.constant 0 : index
    %15 = vector.load %arg1[%c0_12, %c0_13] : memref<8x6xi32, #tpu.memory_space<vmem>>, vector<8x6xi32>
    %16 = tpu.iota {dimensions = array<i32: 1>} : vector<8x10xi32>
    %cst_14 = arith.constant 0.000000e+00 : f32
    %17 = vector.broadcast %cst_14 : f32 to vector<8x10xf32>
    %18 = vector.extract_strided_slice %15 {offsets = [0, 0], sizes = [8, 1], strides = [1, 1]} : vector<8x6xi32> to vector<8x1xi32>
    %19 = vector.broadcast %18 : vector<8x1xi32> to vector<8x10xi32>
    %20 = arith.cmpi eq, %19, %16 : vector<8x10xi32>
    %21 = arith.extui %20 : vector<8x10xi1> to vector<8x10xi32>
    %22 = arith.sitofp %21 : vector<8x10xi32> to vector<8x10xf32>
    %23 = arith.addf %17, %22 : vector<8x10xf32>
    %24 = vector.extract_strided_slice %15 {offsets = [0, 1], sizes = [8, 1], strides = [1, 1]} : vector<8x6xi32> to vector<8x1xi32>
    %25 = vector.broadcast %24 : vector<8x1xi32> to vector<8x10xi32>
    %26 = arith.cmpi eq, %25, %16 : vector<8x10xi32>
    %27 = arith.extui %26 : vector<8x10xi1> to vector<8x10xi32>
    %28 = arith.sitofp %27 : vector<8x10xi32> to vector<8x10xf32>
    %29 = arith.addf %23, %28 : vector<8x10xf32>
    %c0_15 = arith.constant 0 : index
    %c0_16 = arith.constant 0 : index
    %30 = vector.load %arg3[%c0_15, %c0_16] : memref<10x16xf32, #tpu.memory_space<vmem>>, vector<10x16xf32>
    %cst_17 = arith.constant dense<0.000000e+00> : vector<8x16xf32>
    %31 = tpu.matmul %29, %30, %cst_17 {dimension_numbers = #tpu.dot_dimension_numbers<[1], [0], [0], [1], [0, 0, 1, 1], [], []>} : vector<8x10xf32>, vector<10x16xf32>, vector<8x16xf32> -> vector<8x16xf32>
    %32 = tpu.iota {dimensions = array<i32: 1>} : vector<8x20xi32>
    %cst_18 = arith.constant 0.000000e+00 : f32
    %33 = vector.broadcast %cst_18 : f32 to vector<8x20xf32>
    %34 = vector.extract_strided_slice %15 {offsets = [0, 2], sizes = [8, 1], strides = [1, 1]} : vector<8x6xi32> to vector<8x1xi32>
    %35 = vector.broadcast %34 : vector<8x1xi32> to vector<8x20xi32>
    %36 = arith.cmpi eq, %35, %32 : vector<8x20xi32>
    %37 = arith.extui %36 : vector<8x20xi1> to vector<8x20xi32>
    %38 = arith.sitofp %37 : vector<8x20xi32> to vector<8x20xf32>
    %39 = arith.addf %33, %38 : vector<8x20xf32>
    %40 = vector.extract_strided_slice %15 {offsets = [0, 3], sizes = [8, 1], strides = [1, 1]} : vector<8x6xi32> to vector<8x1xi32>
    %41 = vector.broadcast %40 : vector<8x1xi32> to vector<8x20xi32>
    %42 = arith.cmpi eq, %41, %32 : vector<8x20xi32>
    %43 = arith.extui %42 : vector<8x20xi1> to vector<8x20xi32>
    %44 = arith.sitofp %43 : vector<8x20xi32> to vector<8x20xf32>
    %45 = arith.addf %39, %44 : vector<8x20xf32>
    %c0_19 = arith.constant 0 : index
    %c0_20 = arith.constant 0 : index
    %46 = vector.load %arg4[%c0_19, %c0_20] : memref<20x16xf32, #tpu.memory_space<vmem>>, vector<20x16xf32>
    %cst_21 = arith.constant dense<0.000000e+00> : vector<8x16xf32>
    %47 = tpu.matmul %45, %46, %cst_21 {dimension_numbers = #tpu.dot_dimension_numbers<[1], [0], [0], [1], [0, 0, 1, 1], [], []>} : vector<8x20xf32>, vector<20x16xf32>, vector<8x16xf32> -> vector<8x16xf32>
    %48 = tpu.iota {dimensions = array<i32: 1>} : vector<8x30xi32>
    %cst_22 = arith.constant 0.000000e+00 : f32
    %49 = vector.broadcast %cst_22 : f32 to vector<8x30xf32>
    %50 = vector.extract_strided_slice %15 {offsets = [0, 4], sizes = [8, 1], strides = [1, 1]} : vector<8x6xi32> to vector<8x1xi32>
    %51 = vector.broadcast %50 : vector<8x1xi32> to vector<8x30xi32>
    %52 = arith.cmpi eq, %51, %48 : vector<8x30xi32>
    %53 = arith.extui %52 : vector<8x30xi1> to vector<8x30xi32>
    %54 = arith.sitofp %53 : vector<8x30xi32> to vector<8x30xf32>
    %55 = arith.addf %49, %54 : vector<8x30xf32>
    %56 = vector.extract_strided_slice %15 {offsets = [0, 5], sizes = [8, 1], strides = [1, 1]} : vector<8x6xi32> to vector<8x1xi32>
    %57 = vector.broadcast %56 : vector<8x1xi32> to vector<8x30xi32>
    %58 = arith.cmpi eq, %57, %48 : vector<8x30xi32>
    %59 = arith.extui %58 : vector<8x30xi1> to vector<8x30xi32>
    %60 = arith.sitofp %59 : vector<8x30xi32> to vector<8x30xf32>
    %61 = arith.addf %55, %60 : vector<8x30xf32>
    %c0_23 = arith.constant 0 : index
    %c0_24 = arith.constant 0 : index
    %62 = vector.load %arg5[%c0_23, %c0_24] : memref<30x16xf32, #tpu.memory_space<vmem>>, vector<30x16xf32>
    %cst_25 = arith.constant dense<0.000000e+00> : vector<8x16xf32>
    %63 = tpu.matmul %61, %62, %cst_25 {dimension_numbers = #tpu.dot_dimension_numbers<[1], [0], [0], [1], [0, 0, 1, 1], [], []>} : vector<8x30xf32>, vector<30x16xf32>, vector<8x16xf32> -> vector<8x16xf32>
    %64 = arith.mulf %31, %14 : vector<8x16xf32>
    %cst_26 = arith.constant dense<0.000000e+00> : vector<8xf32>
    %65 = vector.multi_reduction <add>, %64, %cst_26 [1] : vector<8x16xf32> to vector<8xf32>
    %66 = vector.shape_cast %65 : vector<8xf32> to vector<8x1xf32>
    %67 = arith.mulf %47, %14 : vector<8x16xf32>
    %cst_27 = arith.constant dense<0.000000e+00> : vector<8xf32>
    %68 = vector.multi_reduction <add>, %67, %cst_27 [1] : vector<8x16xf32> to vector<8xf32>
    %69 = vector.shape_cast %68 : vector<8xf32> to vector<8x1xf32>
    %70 = arith.mulf %47, %31 : vector<8x16xf32>
    %cst_28 = arith.constant dense<0.000000e+00> : vector<8xf32>
    %71 = vector.multi_reduction <add>, %70, %cst_28 [1] : vector<8x16xf32> to vector<8xf32>
    %72 = vector.shape_cast %71 : vector<8xf32> to vector<8x1xf32>
    %73 = arith.mulf %63, %14 : vector<8x16xf32>
    %cst_29 = arith.constant dense<0.000000e+00> : vector<8xf32>
    %74 = vector.multi_reduction <add>, %73, %cst_29 [1] : vector<8x16xf32> to vector<8xf32>
    %75 = vector.shape_cast %74 : vector<8xf32> to vector<8x1xf32>
    %76 = arith.mulf %63, %31 : vector<8x16xf32>
    %cst_30 = arith.constant dense<0.000000e+00> : vector<8xf32>
    %77 = vector.multi_reduction <add>, %76, %cst_30 [1] : vector<8x16xf32> to vector<8xf32>
    %78 = vector.shape_cast %77 : vector<8xf32> to vector<8x1xf32>
    %79 = arith.mulf %63, %47 : vector<8x16xf32>
    %cst_31 = arith.constant dense<0.000000e+00> : vector<8xf32>
    %80 = vector.multi_reduction <add>, %79, %cst_31 [1] : vector<8x16xf32> to vector<8xf32>
    %81 = vector.shape_cast %80 : vector<8xf32> to vector<8x1xf32>
    %c0_32 = arith.constant 0 : index
    %c0_33 = arith.constant 0 : index
    %82 = vector.load %arg10[%c0_32, %c0_33] : memref<16x32xf32, #tpu.memory_space<vmem>>, vector<16x32xf32>
    %c0_34 = arith.constant 0 : index
    %c0_35 = arith.constant 0 : index
    %83 = vector.load %arg11[%c0_34, %c0_35] : memref<6x32xf32, #tpu.memory_space<vmem>>, vector<6x32xf32>
    %cst_36 = arith.constant dense<0.000000e+00> : vector<8x32xf32>
    %84 = tpu.matmul %14, %82, %cst_36 {dimension_numbers = #tpu.dot_dimension_numbers<[1], [0], [0], [1], [0, 0, 1, 1], [], []>} : vector<8x16xf32>, vector<16x32xf32>, vector<8x32xf32> -> vector<8x32xf32>
    %85 = vector.extract_strided_slice %83 {offsets = [0, 0], sizes = [1, 32], strides = [1, 1]} : vector<6x32xf32> to vector<1x32xf32>
    %86 = vector.broadcast %66 : vector<8x1xf32> to vector<8x32xf32>
    %87 = vector.broadcast %85 : vector<1x32xf32> to vector<8x32xf32>
    %88 = arith.mulf %86, %87 : vector<8x32xf32>
    %89 = arith.addf %84, %88 : vector<8x32xf32>
    %90 = vector.extract_strided_slice %83 {offsets = [1, 0], sizes = [1, 32], strides = [1, 1]} : vector<6x32xf32> to vector<1x32xf32>
    %91 = vector.broadcast %69 : vector<8x1xf32> to vector<8x32xf32>
    %92 = vector.broadcast %90 : vector<1x32xf32> to vector<8x32xf32>
    %93 = arith.mulf %91, %92 : vector<8x32xf32>
    %94 = arith.addf %89, %93 : vector<8x32xf32>
    %95 = vector.extract_strided_slice %83 {offsets = [2, 0], sizes = [1, 32], strides = [1, 1]} : vector<6x32xf32> to vector<1x32xf32>
    %96 = vector.broadcast %72 : vector<8x1xf32> to vector<8x32xf32>
    %97 = vector.broadcast %95 : vector<1x32xf32> to vector<8x32xf32>
    %98 = arith.mulf %96, %97 : vector<8x32xf32>
    %99 = arith.addf %94, %98 : vector<8x32xf32>
    %100 = vector.extract_strided_slice %83 {offsets = [3, 0], sizes = [1, 32], strides = [1, 1]} : vector<6x32xf32> to vector<1x32xf32>
    %101 = vector.broadcast %75 : vector<8x1xf32> to vector<8x32xf32>
    %102 = vector.broadcast %100 : vector<1x32xf32> to vector<8x32xf32>
    %103 = arith.mulf %101, %102 : vector<8x32xf32>
    %104 = arith.addf %99, %103 : vector<8x32xf32>
    %105 = vector.extract_strided_slice %83 {offsets = [4, 0], sizes = [1, 32], strides = [1, 1]} : vector<6x32xf32> to vector<1x32xf32>
    %106 = vector.broadcast %78 : vector<8x1xf32> to vector<8x32xf32>
    %107 = vector.broadcast %105 : vector<1x32xf32> to vector<8x32xf32>
    %108 = arith.mulf %106, %107 : vector<8x32xf32>
    %109 = arith.addf %104, %108 : vector<8x32xf32>
    %110 = vector.extract_strided_slice %83 {offsets = [5, 0], sizes = [1, 32], strides = [1, 1]} : vector<6x32xf32> to vector<1x32xf32>
    %111 = vector.broadcast %81 : vector<8x1xf32> to vector<8x32xf32>
    %112 = vector.broadcast %110 : vector<1x32xf32> to vector<8x32xf32>
    %113 = arith.mulf %111, %112 : vector<8x32xf32>
    %114 = arith.addf %109, %113 : vector<8x32xf32>
    %c0_37 = arith.constant 0 : index
    %c0_38 = arith.constant 0 : index
    %115 = vector.load %arg12[%c0_37, %c0_38] : memref<1x32xf32, #tpu.memory_space<vmem>>, vector<1x32xf32>
    %116 = vector.broadcast %115 : vector<1x32xf32> to vector<8x32xf32>
    %117 = arith.addf %114, %116 : vector<8x32xf32>
    %cst_39 = arith.constant 0.000000e+00 : f32
    %118 = vector.broadcast %cst_39 : f32 to vector<8x32xf32>
    %119 = arith.maximumf %117, %118 : vector<8x32xf32>
    %c0_40 = arith.constant 0 : index
    %c0_41 = arith.constant 0 : index
    %120 = vector.load %arg13[%c0_40, %c0_41] : memref<32x128xf32, #tpu.memory_space<vmem>>, vector<32x128xf32>
    %cst_42 = arith.constant dense<0.000000e+00> : vector<8x128xf32>
    %121 = tpu.matmul %119, %120, %cst_42 {dimension_numbers = #tpu.dot_dimension_numbers<[1], [0], [0], [1], [0, 0, 1, 1], [], []>} : vector<8x32xf32>, vector<32x128xf32>, vector<8x128xf32> -> vector<8x128xf32>
    %c0_43 = arith.constant 0 : index
    %c0_44 = arith.constant 0 : index
    %122 = vector.load %arg14[%c0_43, %c0_44] : memref<1x128xf32, #tpu.memory_space<vmem>>, vector<1x128xf32>
    %123 = vector.broadcast %122 : vector<1x128xf32> to vector<8x128xf32>
    %124 = arith.addf %121, %123 : vector<8x128xf32>
    %125 = arith.negf %124 : vector<8x128xf32>
    %126 = math.exp %125 : vector<8x128xf32>
    %cst_45 = arith.constant 1.000000e+00 : f32
    %127 = vector.broadcast %cst_45 : f32 to vector<8x128xf32>
    %128 = arith.addf %127, %126 : vector<8x128xf32>
    %129 = arith.divf %127, %128 : vector<8x128xf32>
    %c0_46 = arith.constant 0 : index
    %c0_47 = arith.constant 0 : index
    %130 = vector.load %arg15[%c0_46, %c0_47] : memref<8x128xf32, #tpu.memory_space<vmem>>, vector<8x128xf32>
    tpu.vector_store %arg15[%c0_46, %c0_47], %129 {strides = array<i32>} : memref<8x128xf32, #tpu.memory_space<vmem>>, vector<8x128xf32>,
    return
  }
  func.func @transform_0(%arg0: i32) -> (i32, i32) {
    %c0_i32 = arith.constant 0 : i32
    %c0_i32_0 = arith.constant 0 : i32
    return %arg0, %c0_i32 : i32, i32
  }
  func.func @transform_1(%arg0: i32) -> (i32, i32) {
    %c0_i32 = arith.constant 0 : i32
    %c0_i32_0 = arith.constant 0 : i32
    return %arg0, %c0_i32 : i32, i32
  }
  func.func @transform_2(%arg0: i32) -> (i32, i32) {
    %c0_i32 = arith.constant 0 : i32
    %c0_i32_0 = arith.constant 0 : i32
    %c0_i32_1 = arith.constant 0 : i32
    return %c0_i32, %c0_i32_0 : i32, i32
  }
  func.func @transform_3(%arg0: i32) -> (i32, i32) {
    %c0_i32 = arith.constant 0 : i32
    %c0_i32_0 = arith.constant 0 : i32
    %c0_i32_1 = arith.constant 0 : i32
    return %c0_i32, %c0_i32_0 : i32, i32
  }
  func.func @transform_4(%arg0: i32) -> (i32, i32) {
    %c0_i32 = arith.constant 0 : i32
    %c0_i32_0 = arith.constant 0 : i32
    %c0_i32_1 = arith.constant 0 : i32
    return %c0_i32, %c0_i32_0 : i32, i32
  }
  func.func @transform_5(%arg0: i32) -> (i32, i32) {
    %c0_i32 = arith.constant 0 : i32
    %c0_i32_0 = arith.constant 0 : i32
    %c0_i32_1 = arith.constant 0 : i32
    return %c0_i32, %c0_i32_0 : i32, i32
  }
  func.func @transform_6(%arg0: i32) -> (i32, i32) {
    %c0_i32 = arith.constant 0 : i32
    %c0_i32_0 = arith.constant 0 : i32
    %c0_i32_1 = arith.constant 0 : i32
    return %c0_i32, %c0_i32_0 : i32, i32
  }
  func.func @transform_7(%arg0: i32) -> (i32, i32) {
    %c0_i32 = arith.constant 0 : i32
    %c0_i32_0 = arith.constant 0 : i32
    %c0_i32_1 = arith.constant 0 : i32
    return %c0_i32, %c0_i32_0 : i32, i32
  }
  func.func @transform_8(%arg0: i32) -> (i32, i32) {
    %c0_i32 = arith.constant 0 : i32
    %c0_i32_0 = arith.constant 0 : i32
    %c0_i32_1 = arith.constant 0 : i32
    return %c0_i32, %c0_i32_0 : i32, i32
  }
  func.func @transform_9(%arg0: i32) -> (i32, i32) {
    %c0_i32 = arith.constant 0 : i32
    %c0_i32_0 = arith.constant 0 : i32
    %c0_i32_1 = arith.constant 0 : i32
    return %c0_i32, %c0_i32_0 : i32, i32
  }
  func.func @transform_10(%arg0: i32) -> (i32, i32) {
    %c0_i32 = arith.constant 0 : i32
    %c0_i32_0 = arith.constant 0 : i32
    %c0_i32_1 = arith.constant 0 : i32
    return %c0_i32, %c0_i32_0 : i32, i32
  }
  func.func @transform_11(%arg0: i32) -> (i32, i32) {
    %c0_i32 = arith.constant 0 : i32
    %c0_i32_0 = arith.constant 0 : i32
    %c0_i32_1 = arith.constant 0 : i32
    return %c0_i32, %c0_i32_0 : i32, i32
  }
  func.func @transform_12(%arg0: i32) -> (i32, i32) {
    %c0_i32 = arith.constant 0 : i32
    %c0_i32_0 = arith.constant 0 : i32
    %c0_i32_1 = arith.constant 0 : i32
    return %c0_i32, %c0_i32_0 : i32, i32
  }
  func.func @transform_13(%arg0: i32) -> (i32, i32) {
    %c0_i32 = arith.constant 0 : i32
    %c0_i32_0 = arith.constant 0 : i32
    %c0_i32_1 = arith.constant 0 : i32
    return %c0_i32, %c0_i32_0 : i32, i32
  }
  func.func @transform_14(%arg0: i32) -> (i32, i32) {
    %c0_i32 = arith.constant 0 : i32
    %c0_i32_0 = arith.constant 0 : i32
    return %arg0, %c0_i32 : i32, i32
  }
}

</mosaic_0001>

<bundles_post_ra>
// kernel: tpu_custom_call.1
= control target key start
LH: loop header
LB: loop body
LE: loop exit
PB: predicated region body
PF: predicated region fallthrough
CT: control target
= control target key end

     0   :  { %v467_v2 = vmov 0   ;;  %v468_v4 = vmov 2   ;;  %v469_v5 = vmov 4   ;;  %s688_s0 = inlined_call_operand.vmem [shape: s32[8,6], index: 0, kind: input, shape index: {}]   ;;  %s689_s1 = inlined_call_operand.vmem [shape: f32[8,128], index: 1, kind: input, shape index: {}]   ;;  %s690_s2 = inlined_call_operand.vmem [shape: f32[10,16], index: 2, kind: input, shape index: {}]   ;;  %s691_s3 = inlined_call_operand.vmem [shape: f32[20,16], index: 3, kind: input, shape index: {}]   ;;  %s692_s4 = inlined_call_operand.vmem [shape: f32[30,16], index: 4, kind: input, shape index: {}]   ;;  %s693_s5 = inlined_call_operand.vmem [shape: f32[128,32], index: 5, kind: input, shape index: {}]   ;;  %s694_s6 = inlined_call_operand.vmem [shape: f32[1,32], index: 6, kind: input, shape index: {}]   ;;  %s695_s7 = inlined_call_operand.vmem [shape: f32[32,16], index: 7, kind: input, shape index: {}]   ;;  %s696_s8 = inlined_call_operand.vmem [shape: f32[1,16], index: 8, kind: input, shape index: {}]   ;;  %s697_s9 = inlined_call_operand.vmem [shape: f32[16,32], index: 9, kind: input, shape index: {}]   ;;  %s698_s10 = inlined_call_operand.vmem [shape: f32[6,32], index: 10, kind: input, shape index: {}]   ;;  %s699_s11 = inlined_call_operand.vmem [shape: f32[1,32], index: 11, kind: input, shape index: {}]   ;;  %s700_s12 = inlined_call_operand.vmem [shape: f32[32,128], index: 12, kind: input, shape index: {}]   ;;  %s701_s13 = inlined_call_operand.vmem [shape: f32[1,128], index: 13, kind: input, shape index: {}]   ;;  %s702_s14 = inlined_call_operand.hbm [shape: f32[8,128], index: 14, kind: output, shape index: {}]  }
   0x1   :  { %v64_v0 = vld [vmem:[%s693_s5 + $0x78] sm:$0xff]  ;;  %v63_v1 = vld [vmem:[%s693_s5 + $0x70] sm:$0xff]  ;;  %426 = vset.pattern.permute.xlu0 %v467_v2  ;;  %v62_v3 = vld [vmem:[%s693_s5 + $0x68] sm:$0xff]  ;;  %428 = vset.pattern.permute.xlu1 %v468_v4 }
   0x2   :  { %69 = vmatpush.msra.mxu0 %v64_v0  ;;  %430 = vset.pattern.permute.xlu2 %v469_v5  ;;  %v123_v6 = vld [vmem:[%s688_s0] sm:$0xff]  ;;  %v60_v8 = vld [vmem:[%s693_s5 + $0x58] sm:$0xff] }
   0x3   :  { %v61_v7 = vld [vmem:[%s693_s5 + $0x60] sm:$0xff]  ;;  %127 = vperm.xlu0 %426, %v123_v6   ;;  %171 = vperm.xlu1 %428, %v123_v6  }
   0x4   :  { %70 = vmatpush.msra.mxu0 %v63_v1  ;;  %216 = vperm.xlu2 %430, %v123_v6  }
   0x6   :  { %71 = vmatpush.msra.mxu0 %v62_v3 }
   0x8   :  { %72 = vmatpush.msra.mxu0 %v61_v7 }
   0x9   :  { %19 = vsyncpa [#allocation3], 0  ;;  %v59_v9 = vld [vmem:[%s693_s5 + $0x50] sm:$0xff]  ;;  %v58_v10 = vld [vmem:[%s693_s5 + $0x48] sm:$0xff]  ;;  %v470_v12 = vmov 1   ;;  %v471_v13 = vmov 3   ;;  %v124_v34 = vlaneseq }
   0xa   :  { %73 = vmatpush.msra.mxu0 %v60_v8  ;;  %v57_v11 = vld [vmem:[%s693_s5 + $0x40] sm:$0xff]  ;;  %v56_v14 = vld [vmem:[%s693_s5 + $0x38] sm:$0xff]  ;;  %v472_v15 = vmov 5   ;;  %v55_v16 = vld [vmem:[%s693_s5 + $0x30] sm:$0xff]  ;;  %vm146_vm0 = vcmask 1041408   ;;  %vm237_vm1 = vcmask 1045504  }
   0xb   :  { %427 = vset.pattern.permute.xlu0 %v470_v12  ;;  %429 = vset.pattern.permute.xlu1 %v471_v13  ;;  %v54_v17 = vld [vmem:[%s693_s5 + $0x28] sm:$0xff]  ;;  %v53_v18 = vld [vmem:[%s693_s5 + $0x20] sm:$0xff]  ;;  %v52_v19 = vld [vmem:[%s693_s5 + $0x18] sm:$0xff]  ;;  %vm191_vm2 = vcmask 1043456   ;;  %v125_v38 = vand.u32 127, %v124_v34  ;;  %v473_v41 = vmov 0.0  }
   0xc   :  { %74 = vmatpush.msra.mxu0 %v59_v9  ;;  %134 = vperm.xlu0 %427, %v123_v6   ;;  %v51_v20 = vld [vmem:[%s693_s5 + $0x10] sm:$0xff]  ;;  %v50_v21 = vld [vmem:[%s693_s5 + $0x8] sm:$0xff]  ;;  %v49_v22 = vld [vmem:[%s693_s5] sm:$0xff]  ;;  %vm142_vm7 = vcmask 80896   ;;  %vm187_vm10 = vcmask 162816   ;;  %vm233_vm11 = vcmask 244736  }
   0xd   :  { %178 = vperm.xlu1 %429, %v123_v6   ;;  %431 = vset.pattern.permute.xlu2 %v472_v15  ;;  %v48_v23 = vld [vmem:[%s689_s1] sm:$0xff]  ;;  %v141_v24 = vld [vmem:[%s690_s2 + $0x8] sm:$0x3]  ;;  %v232_v26 = vld [vmem:[%s692_s4 + $0x18] sm:$0x3f]  ;;  %vm98_vm12 = vcmask 261120  }
   0xe   :  { %75 = vmatpush.msra.mxu0 %v58_v10  ;;  %223 = vperm.xlu2 %431, %v123_v6   ;;  %v140_v25 = vld [vmem:[%s690_s2] sm:$0xff]  ;;  %v186_v27 = vld [vmem:[%s691_s3 + $0x10] sm:$0xf]  ;;  %v185_v29 = vld [vmem:[%s691_s3 + $0x8] sm:$0xff]  ;;  %vm262_vm13 = vcmask 130048  }
   0xf   :  { %405 = vmatpush.msk.msra.mxu2 %vm146_vm0, %v141_v24  ;;  %409 = vmatpush.msk.msra.mxu3 %vm191_vm2, %v186_v27  ;;  %v231_v28 = vld [vmem:[%s692_s4 + $0x10] sm:$0xff]  ;;  %v93_v30 = vld [vmem:[%s695_s7 + $0x18] sm:$0xff]  ;;  %v184_v31 = vld [vmem:[%s691_s3] sm:$0xff] }
  0x10   :  { %76 = vmatpush.msra.mxu0 %v57_v11  ;;  %v230_v32 = vld [vmem:[%s692_s4 + $0x8] sm:$0xff]  ;;  %114 = vmatpush.msra.mxu1 %v93_v30  ;;  %v229_v33 = vld [vmem:[%s692_s4] sm:$0xff]  ;;  %v92_v39 = vld [vmem:[%s695_s7 + $0x10] sm:$0xff] }
  0x11   :  { %165 = vmatpush.msra.mxu2 %v140_v25  ;;  %209 = vmatpush.msra.mxu3 %v185_v29  ;;  %v91_v40 = vld [vmem:[%s695_s7 + $0x8] sm:$0xff]  ;;  %v90_v47 = vld [vmem:[%s695_s7] sm:$0xff] }
  0x12   :  { %77 = vmatpush.msra.mxu0 %v56_v14  ;;  %115 = vmatpush.msra.mxu1 %v92_v39  ;;  %v433_v55 = vld [vmem:[%s694_s6] ss:$0 sm:$0xff]  ;;  %v287_v59 = vld [vmem:[%s697_s9 + $0x8] sm:$0xff] }
  0x13   :  { %413 = vmatpush.msk.msrb.mxu2 %vm237_vm1, %v232_v26  ;;  %210 = vmatpush.msra.mxu3 %v184_v31  ;;  %v286_v60 = vld [vmem:[%s697_s9] sm:$0xff] }
  0x14   :  { %78 = vmatpush.msra.mxu0 %v55_v16  ;;  %432 = vset.pattern.permute.xlu0 %v472_v15  ;;  %v434_v1 = vld [vmem:[%s696_s8] ss:$0 sm:$0xff]  ;;  %v338_v16 = vld [vmem:[%s700_s12 + $0x18] sm:$0xff] }
  0x15   :  { %254 = vmatpush.msrb.mxu2 %v231_v28  ;;  %116 = vmatpush.msra.mxu1 %v91_v40 }
  0x16   :  { %79 = vmatpush.msra.mxu0 %v54_v17  ;;  %308 = vmatpush.msrb.mxu3 %v287_v59  ;;  %v337_v17 = vld [vmem:[%s700_s12 + $0x10] sm:$0xff] }
  0x17   :  { %255 = vmatpush.msrb.mxu2 %v230_v32  ;;  %117 = vmatpush.msra.mxu1 %v90_v47 }
  0x18   :  { %80 = vmatpush.msra.mxu0 %v53_v18  ;;  %309 = vmatpush.msrb.mxu3 %v286_v60  ;;  %v336_v18 = vld [vmem:[%s700_s12 + $0x8] sm:$0xff] }
  0x19   :  { %256 = vmatpush.msrb.mxu2 %v229_v33  ;;  %358 = vmatpush.msrb.mxu1 %v338_v16 }
  0x1a   :  { %81 = vmatpush.msra.mxu0 %v52_v19  ;;  %v335_v19 = vld [vmem:[%s700_s12] sm:$0xff] }
  0x1b   :  { %359 = vmatpush.msrb.mxu1 %v337_v17 }
  0x1c   :  { %82 = vmatpush.msra.mxu0 %v51_v20 }
  0x1d   :  { %360 = vmatpush.msrb.mxu1 %v336_v18 }
  0x1e   :  { %83 = vmatpush.msra.mxu0 %v50_v21  ;;  %v288_v21 = vld [vmem:[%s698_s10] sm:$0x3f] }
  0x1f   :  { %361 = vmatpush.msrb.mxu1 %v335_v19  ;;  %v314_v25 = vperm.slane %v288_v21, 1  ;;  %v317_v26 = vperm.slane %v288_v21, 2  ;;  %v320_v31 = vperm.slane %v288_v21, 3  ;;  %v323_v34 = vperm.slane %v288_v21, 4 }
  0x20   :  { %84 = vmatpush.msra.mxu0 %v49_v22  ;;  %v326_v39 = vperm.slane %v288_v21, 5 }
  0x21   :  { %85 = vmatmul.f32.vlgmr.msra.gmra.mxu0 %v48_v23  ;;  %v289_v23 = vperm.slane %v288_v21, 0 }
  0x5e   :  { %v217_v35 = vpop.permute.xlu2 %216 }
  0x5f   :  { %vm218_vm6 = vcmp.eq.s32.totalorder %v217_v35, %v125_v38 }
  0x60   :  { %v411_v52 = vsel %vm218_vm6, 1.0, %v473_v41 }
  0x68   :  { %v224_v44 = vpop.permute.xlu2 %223 }
  0x69   :  { %vm225_vm9 = vcmp.eq.s32.totalorder %v224_v44, %v125_v38 }
  0x6a   :  { %v412_v53 = vsel %vm225_vm9, 1.0, %v473_v41 }
  0x6b   :  { %v228_v54 = vadd.f32 %v412_v53, %v411_v52 }
  0x75   :  { %v128_v36 = vpop.permute.xlu0 %127  ;;  %v172_v37 = vpop.permute.xlu1 %171 }
  0x76   :  { %vm129_vm3 = vcmp.eq.s32.totalorder %v128_v36, %v125_v38  ;;  %vm173_vm4 = vcmp.eq.s32.totalorder %v172_v37, %v125_v38 }
  0x77   :  { %v403_v42 = vsel %vm129_vm3, 1.0, %v473_v41  ;;  %v407_v45 = vsel %vm173_vm4, 1.0, %v473_v41 }
  0x7e   :  { %v135_v43 = vpop.permute.xlu0 %134 }
  0x7f   :  { %vm136_vm5 = vcmp.eq.s32.totalorder %v135_v43, %v125_v38  ;;  %v179_v46 = vpop.permute.xlu1 %178  ;;  %v435_v43 = vld [vmem:[%s699_s11] ss:$0 sm:$0xff]  ;;  %s474_s11 = smov [#allocation2]  }
  0x80   :  { %v404_v48 = vsel %vm136_vm5, 1.0, %v473_v41  ;;  %vm180_vm8 = vcmp.eq.s32.totalorder %v179_v46, %v125_v38  ;;  %s391_s3 = sshll.u32 %s474_s11, 4  ;;  %s392_s3 = int_to_ptr.vmem [resolvable:$true] %s391_s3 }
  0x81   :  { %v139_v49 = vadd.f32 %v404_v48, %v403_v42  ;;  %v408_v50 = vsel %vm180_vm8, 1.0, %v473_v41 }
  0x82   :  { %v183_v51 = vadd.f32 %v408_v50, %v407_v45 }
  0x83   :  { %406 = vmatmul.msk.f32.vlgmr.msra.gmra.mxu2 %vm142_vm7, %v139_v49  ;;  %v436_v49 = vld [vmem:[%s701_s13] ss:$0 sm:$0xff]  ;;  %s393_s13 = sshll.u32 %s702_s14, 4  ;;  %s394_s13 = int_to_ptr.hbm [resolvable:$true] %s393_s13 }
  0x84   :  { %410 = vmatmul.msk.f32.vlgmr.msra.gmra.mxu3 %vm187_vm10, %v183_v51 }
  0x8b   :  { %414 = vmatmul.msk.f32.vlgmr.msrb.gmra.mxu2 %vm233_vm11, %v228_v54 }
  0x9e   :  { %v86_v56 = vpop.f32.mrf.mxu0 }
  0x9f   :  { %v87_v57 = vadd.f32 %v433_v55, %v86_v56 }
  0xa1   :  { %v89_v58 = vmax.f32 %v87_v57, 0.0 }
  0xa3   :  { %402 = vmatmul.msk.f32.vlgmr.msra.gmra.mxu1 %vm98_vm12, %v89_v58 }
 0x106   :  { %v167_v61 = vpop.f32.mrf.mxu2 }
 0x107   :  { %v212_v62 = vpop.f32.mrf.mxu3 }
 0x108   :  { %v270_v63 = vmul.f32 %v212_v62, %v167_v61 }
 0x10a   :  { %v271_v0 = vsel %vm262_vm13, %v270_v63, 0.0 }
 0x10b   :  { %272 = vadd.xlane.f32.xlu0 %v271_v0 }
 0x10e   :  { %v258_v9 = vpop.f32.mrf.mxu2 }
 0x10f   :  { %v278_v11 = vmul.f32 %v258_v9, %v167_v61  ;;  %v282_v14 = vmul.f32 %v258_v9, %v212_v62 }
 0x111   :  { %v279_v13 = vsel %vm262_vm13, %v278_v11, 0.0  ;;  %v283_v15 = vsel %vm262_vm13, %v282_v14, 0.0 }
 0x120   :  { %v119_v2 = vpop.f32.mrf.mxu1 }
 0x121   :  { %v120_v3 = vadd.f32 %v434_v1, %v119_v2 }
 0x123   :  { %v122_v4 = vmax.f32 %v120_v3, 0.0 }
 0x125   :  { %415 = vmatmul.msk.f32.vlgmr.msrb.gmra.mxu3 %vm262_vm13, %v122_v4  ;;  %v266_v5 = vmul.f32 %v212_v62, %v122_v4  ;;  %v261_v6 = vmul.f32 %v167_v61, %v122_v4  ;;  %v274_v10 = vmul.f32 %v258_v9, %v122_v4 }
 0x127   :  { %v267_v7 = vsel %vm262_vm13, %v266_v5, 0.0  ;;  %v263_v8 = vsel %vm262_vm13, %v261_v6, 0.0  ;;  %v275_v12 = vsel %vm262_vm13, %v274_v10, 0.0 }
 0x128   :  { %268 = vadd.xlane.f32.xlu2 %v267_v7  ;;  %264 = vadd.xlane.f32.xlu1 %v263_v8 }
 0x130   :  { %276 = vadd.xlane.f32.xlu2 %v275_v12  ;;  %280 = vadd.xlane.f32.xlu1 %v279_v13 }
 0x138   :  { %284 = vadd.xlane.f32.xlu2 %v283_v15 }
 0x17e   :  { %v273_v28 = vpop.xlane.xlu0 %272 }
 0x17f   :  { %v318_v33 = vmul.f32 %v317_v26, %v273_v28 }
 0x19b   :  { %v269_v20 = vpop.xlane.xlu2 %268  ;;  %v265_v22 = vpop.xlane.xlu1 %264 }
 0x19c   :  { %v290_v27 = vmul.f32 %v289_v23, %v265_v22  ;;  %v315_v30 = vmul.f32 %v314_v25, %v269_v20 }
 0x1a3   :  { %v277_v24 = vpop.xlane.xlu2 %276  ;;  %v281_v36 = vpop.xlane.xlu1 %280 }
 0x1a4   :  { %v321_v37 = vmul.f32 %v320_v31, %v277_v24  ;;  %v324_v41 = vmul.f32 %v323_v34, %v281_v36 }
 0x1a8   :  { %v311_v29 = vpop.f32.mrf.mxu3 }
 0x1a9   :  { %v312_v32 = vadd.f32 %v311_v29, %v290_v27 }
 0x1ab   :  { %v316_v35 = vadd.f32 %v315_v30, %v312_v32  ;;  %v285_v40 = vpop.xlane.xlu2 %284 }
 0x1ac   :  { %v327_v45 = vmul.f32 %v326_v39, %v285_v40 }
 0x1ad   :  { %v319_v38 = vadd.f32 %v318_v33, %v316_v35 }
 0x1af   :  { %v322_v42 = vadd.f32 %v321_v37, %v319_v38 }
 0x1b1   :  { %v325_v44 = vadd.f32 %v324_v41, %v322_v42 }
 0x1b3   :  { %v328_v46 = vadd.f32 %v327_v45, %v325_v44 }
 0x1b5   :  { %v333_v47 = vadd.f32 %v435_v43, %v328_v46 }
 0x1b7   :  { %v334_v48 = vmax.f32 %v333_v47, 0.0 }
 0x1b9   :  { %416 = vmatmul.msk.f32.vlgmr.msrb.gmra.mxu1 %vm98_vm12, %v334_v48 }
 0x236   :  { %v363_v50 = vpop.f32.mrf.mxu1 }
 0x237   :  { %v364_v51 = vadd.f32 %v436_v49, %v363_v50 }
 0x239   :  { %v417_v52 = vmul.f32 -1.442695, %v364_v51 }
 0x23b   :  { %437 = vpow2.f32 %v417_v52 }
 0x241   :  { %v438_v53 = vpop.eup %437 }
 0x242   :  { %v369_v54 = vadd.f32 1.0, %v438_v53 }
 0x244   :  { %439 = vrcp.f32 %v369_v54  ;;  %v381_v58 = vand.u32 2147483648, %v369_v54  ;;  %v379_v60 = vand.u32 2147483647, %v369_v54  ;;  %vm375_vm15 = vweird.f32 %v369_v54 }
 0x246   :  { %v382_v62 = vor.u32 1.1754944e-38, %v381_v58  ;;  %vm380_vm1 = vcmp.eq.f32.partialorder %v379_v60, 8.507059e+37 }
 0x24a   :  { %v440_v55 = vpop.eup %439 }
 0x24b   :  { %v371_v56 = vmul.f32 %v440_v55, %v369_v54  ;;  %vm376_vm14 = vweird.f32 %v440_v55 }
 0x24c   :  { %vm377_vm0 = vmor %vm375_vm15, %vm376_vm14 }
 0x24d   :  { %v372_v57 = vsub.f32 1.0, %v371_v56 }
 0x24f   :  { %v373_v59 = vmul.f32 %v440_v55, %v372_v57 }
 0x251   :  { %v374_v61 = vadd.f32 %v440_v55, %v373_v59 }
 0x253   :  { %v378_v63 = vsel %vm377_vm0, %v440_v55, %v374_v61 }
 0x254   :  { %v383_v0 = vsel %vm380_vm1, %v382_v62, %v378_v63 }
 0x255   :  { %385 = vst [vmem:[#allocation2] sm:$0xff] %v383_v0 }
 0x256   :  { %396 = dma.vmem_to_hbm [thread:$0]  %s392_s3, 128, %s394_s13, [#allocation3]  }
 0x257   :  { %465 = dma.done.wait [#allocation3], 128  }
 0x258   :  { %466 = vsyncadd [#allocation3], 4294967168 }
 0x259   :  { %401 = vsyncpa [#allocation3], 1 }

</bundles_post_ra>
